<compile_context>
chip_gen: v5e
topology: v5e:2x2
jax: 0.10.0
libtpu: 0.0.40
codegen_flags: <defaults>
</compile_context>

<pallas_src>
import jax
import jax.numpy as jnp
from jax.experimental import pallas as pl
from jax.experimental.pallas import tpu as pltpu


# ----------------------------- kernels -------------------------------------


def _lstm_step_nohidden_kernel(x_ref, wih_ref, b_ref, hc_ref):
    """LSTM step with h0 = c0 = 0: gates = x@W_ih^T + b ; c1 = i*g ; h1 = o*tanh(c1).

    Output packed along lanes: hc = [h1 | c1] -> [N, 2E].
    """
    gates = (jnp.dot(x_ref[...], wih_ref[...], preferred_element_type=jnp.float32)
             + b_ref[...])                                 # [N, 4E]

    e = hc_ref.shape[-1] // 2
    sig = jax.nn.sigmoid(gates)                            # full-tile EUP pass
    tnh = jnp.tanh(gates)                                  # full-tile EUP pass
    i_g = sig[:, 0 * e:1 * e]
    g_g = tnh[:, 2 * e:3 * e]
    o_g = sig[:, 3 * e:4 * e]

    c1 = i_g * g_g                                         # f*c0 term vanishes (c0 = 0)
    h1 = o_g * jnp.tanh(c1)

    hc_ref[...] = jnp.concatenate([h1, c1], axis=-1).astype(hc_ref.dtype)


def _lstm_step_hidden_kernel(x_ref, h0_ref, c0_ref, wih_ref, whh_ref, b_ref, hc_ref):
    """LSTM step with provided hidden state; two tiny MXU dots summed in f32.

    x: [N, D], h0/c0: [N, E], wih: [D, 4E], whh: [E, 4E], b: [1, 4E].
    Output packed along lanes: hc = [h1 | c1] -> [N, 2E].
    """
    gates = (jnp.dot(x_ref[...], wih_ref[...], preferred_element_type=jnp.float32)
             + jnp.dot(h0_ref[...], whh_ref[...], preferred_element_type=jnp.float32)
             + b_ref[...])                                 # [N, 4E]

    e = hc_ref.shape[-1] // 2
    sig = jax.nn.sigmoid(gates)
    tnh = jnp.tanh(gates)
    i_g = sig[:, 0 * e:1 * e]
    f_g = sig[:, 1 * e:2 * e]
    g_g = tnh[:, 2 * e:3 * e]
    o_g = sig[:, 3 * e:4 * e]

    c1 = f_g * c0_ref[...] + i_g * g_g
    h1 = o_g * jnp.tanh(c1)

    hc_ref[...] = jnp.concatenate([h1, c1], axis=-1).astype(hc_ref.dtype)


# ------------------------- jitted functional forwards ----------------------


@jax.jit
def _forward_nohidden(x, w_ih_t, b_row):
    """x: [B, V, D]; w_ih_t: [D, 4E]; b_row: [1, 4E]."""
    b, v, d = x.shape
    n = b * v
    e = b_row.shape[-1] // 4
    x2d = x.reshape(n, d).astype(jnp.float32)

    hc = pl.pallas_call(
        _lstm_step_nohidden_kernel,
        out_shape=jax.ShapeDtypeStruct((n, 2 * e), jnp.float32),
        in_specs=[pl.BlockSpec(memory_space=pltpu.VMEM)] * 3,
        out_specs=pl.BlockSpec(memory_space=pltpu.VMEM),
    )(x2d, w_ih_t, b_row)

    h1 = hc[:, :e]
    c1 = hc[:, e:]
    return h1.reshape(b, v, e), h1[None], c1[None]


@jax.jit
def _forward_hidden(x, h0, c0, w_ih_t, w_hh_t, b_row):
    """x: [B, V, D]; h0/c0: [1, B*V, E]; w_ih_t: [D, 4E]; w_hh_t: [E, 4E]; b_row: [1, 4E]."""
    b, v, d = x.shape
    n = b * v
    e = b_row.shape[-1] // 4
    x2d = x.reshape(n, d).astype(jnp.float32)
    h0f = h0.reshape(n, e).astype(jnp.float32)
    c0f = c0.reshape(n, e).astype(jnp.float32)

    hc = pl.pallas_call(
        _lstm_step_hidden_kernel,
        out_shape=jax.ShapeDtypeStruct((n, 2 * e), jnp.float32),
        in_specs=[pl.BlockSpec(memory_space=pltpu.VMEM)] * 6,
        out_specs=pl.BlockSpec(memory_space=pltpu.VMEM),
    )(x2d, h0f, c0f, w_ih_t, w_hh_t, b_row)

    h1 = hc[:, :e]
    c1 = hc[:, e:]
    return h1.reshape(b, v, e), h1[None], c1[None]


# --------------------------------- module -----------------------------------


class VehicleEncoderPallas:
    """JAX/Pallas port of the PyTorch VehicleEncoder (LSTM, batch_first, 1 layer)."""

    def __init__(self, input_dim, embedding_dim, key):
        self.input_dim = input_dim
        self.embedding_dim = embedding_dim
        k = 1.0 / jnp.sqrt(jnp.float32(embedding_dim))
        k1, k2, k3, k4 = jax.random.split(key, 4)
        # PyTorch LSTM parameter shapes: W_ih [4E, D], W_hh [4E, E], b_ih/b_hh [4E]
        self.w_ih = jax.random.uniform(k1, (4 * embedding_dim, input_dim),
                                       jnp.float32, -k, k)
        self.w_hh = jax.random.uniform(k2, (4 * embedding_dim, embedding_dim),
                                       jnp.float32, -k, k)
        self.b_ih = jax.random.uniform(k3, (4 * embedding_dim,), jnp.float32, -k, k)
        self.b_hh = jax.random.uniform(k4, (4 * embedding_dim,), jnp.float32, -k, k)
        # Pre-transposed / pre-summed views consumed by the kernels.
        self._w_ih_t = jnp.asarray(self.w_ih.T)               # [D, 4E]
        self._w_hh_t = jnp.asarray(self.w_hh.T)               # [E, 4E]
        self._b_row = (self.b_ih + self.b_hh)[None, :]        # [1, 4E]

    def __call__(self, x, hidden=None):
        b, v, _ = x.shape
        e = self.embedding_dim

        if hidden is None:
            # Specialized cold-start path: no zero h0/c0 buffers, no h0 matmul.
            output, hn, cn = _forward_nohidden(x, self._w_ih_t, self._b_row)
        else:
            h0, c0 = hidden
            output, hn, cn = _forward_hidden(x, h0, c0, self._w_ih_t,
                                             self._w_hh_t, self._b_row)

        assert output.shape == (b, v, e)
        return output, (hn, cn)


# --------------------------------- reference ---------------------------------


def _reference_lstm_step(x2d, h0, c0, w_ih, w_hh, b_ih, b_hh):
    """Pure-JAX reference matching torch.nn.LSTM single-step semantics."""
    gates = x2d @ w_ih.T + b_ih + h0 @ w_hh.T + b_hh
    e = h0.shape[-1]
    i = jax.nn.sigmoid(gates[:, 0 * e:1 * e])
    f = jax.nn.sigmoid(gates[:, 1 * e:2 * e])
    g = jnp.tanh(gates[:, 2 * e:3 * e])
    o = jax.nn.sigmoid(gates[:, 3 * e:4 * e])
    c1 = f * c0 + i * g
    h1 = o * jnp.tanh(c1)
    return h1, c1


if __name__ == "__main__":
    B, V, D, E = 2, 8, 4, 32   # batch, num_vehicles, input_dim, embedding_dim
    key = jax.random.PRNGKey(0)
    k_param, k_x, k_h, k_c = jax.random.split(key, 4)

    enc = VehicleEncoderPallas(D, E, k_param)
    x = jax.random.normal(k_x, (B, V, D), jnp.float32)

    # --- Path 1: hidden is None (specialized no-hidden kernel) ---
    out, (hn, cn) = enc(x, hidden=None)
    out = jax.block_until_ready(out)
    hn = jax.block_until_ready(hn)
    cn = jax.block_until_ready(cn)

    assert out.shape == (B, V, E)
    assert hn.shape == (1, B * V, E) and cn.shape == (1, B * V, E)

    h_ref, c_ref = _reference_lstm_step(
        x.reshape(B * V, D), jnp.zeros((B * V, E)), jnp.zeros((B * V, E)),
        enc.w_ih, enc.w_hh, enc.b_ih, enc.b_hh)
    assert jnp.allclose(out.reshape(B * V, E), h_ref, atol=1e-5)
    assert jnp.allclose(hn[0], h_ref, atol=1e-5)
    assert jnp.allclose(cn[0], c_ref, atol=1e-5)

    # --- Path 2: hidden provided (two-dot fused-gate kernel) ---
    h0 = jax.random.normal(k_h, (1, B * V, E), jnp.float32)
    c0 = jax.random.normal(k_c, (1, B * V, E), jnp.float32)
    out2, (hn2, cn2) = enc(x, hidden=(h0, c0))
    out2 = jax.block_until_ready(out2)
    hn2 = jax.block_until_ready(hn2)
    cn2 = jax.block_until_ready(cn2)

    assert out2.shape == (B, V, E)
    assert hn2.shape == (1, B * V, E) and cn2.shape == (1, B * V, E)

    h_ref2, c_ref2 = _reference_lstm_step(
        x.reshape(B * V, D), h0[0], c0[0],
        enc.w_ih, enc.w_hh, enc.b_ih, enc.b_hh)
    assert jnp.allclose(out2.reshape(B * V, E), h_ref2, atol=1e-5)
    assert jnp.allclose(hn2[0], h_ref2, atol=1e-5)
    assert jnp.allclose(cn2[0], c_ref2, atol=1e-5)

    print("KERNEL_OK")
</pallas_src>

<mosaic_0001>
module attributes {stable_mosaic.version = 11 : i64} {
  func.func @_lstm_step_nohidden_kernel(%arg0: memref<16x4xf32, #tpu.memory_space<vmem>>, %arg1: memref<4x128xf32, #tpu.memory_space<vmem>>, %arg2: memref<1x128xf32, #tpu.memory_space<vmem>>, %arg3: memref<16x64xf32, #tpu.memory_space<vmem>>) attributes {dimension_semantics = [], scalar_prefetch = 0 : i64, scratch_operands = 0 : i64, tpu.core_type = #tpu.core_type<tc>} {
    %c0 = arith.constant 0 : index
    %c0_0 = arith.constant 0 : index
    %0 = vector.load %arg0[%c0, %c0_0] : memref<16x4xf32, #tpu.memory_space<vmem>>, vector<16x4xf32>
    %c0_1 = arith.constant 0 : index
    %c0_2 = arith.constant 0 : index
    %1 = vector.load %arg1[%c0_1, %c0_2] : memref<4x128xf32, #tpu.memory_space<vmem>>, vector<4x128xf32>
    %cst = arith.constant dense<0.000000e+00> : vector<16x128xf32>
    %2 = tpu.matmul %0, %1, %cst {dimension_numbers = #tpu.dot_dimension_numbers<[1], [0], [0], [1], [0, 0, 1, 1], [], []>} : vector<16x4xf32>, vector<4x128xf32>, vector<16x128xf32> -> vector<16x128xf32>
    %c0_3 = arith.constant 0 : index
    %c0_4 = arith.constant 0 : index
    %3 = vector.load %arg2[%c0_3, %c0_4] : memref<1x128xf32, #tpu.memory_space<vmem>>, vector<1x128xf32>
    %4 = vector.broadcast %3 : vector<1x128xf32> to vector<16x128xf32>
    %5 = arith.addf %2, %4 : vector<16x128xf32>
    %6 = arith.negf %5 : vector<16x128xf32>
    %7 = math.exp %6 : vector<16x128xf32>
    %cst_5 = arith.constant 1.000000e+00 : f32
    %8 = vector.broadcast %cst_5 : f32 to vector<16x128xf32>
    %9 = arith.addf %8, %7 : vector<16x128xf32>
    %10 = arith.divf %8, %9 : vector<16x128xf32>
    %11 = math.tanh %5 : vector<16x128xf32>
    %12 = vector.extract_strided_slice %10 {offsets = [0, 0], sizes = [16, 32], strides = [1, 1]} : vector<16x128xf32> to vector<16x32xf32>
    %13 = vector.extract_strided_slice %11 {offsets = [0, 64], sizes = [16, 32], strides = [1, 1]} : vector<16x128xf32> to vector<16x32xf32>
    %14 = vector.extract_strided_slice %10 {offsets = [0, 96], sizes = [16, 32], strides = [1, 1]} : vector<16x128xf32> to vector<16x32xf32>
    %15 = arith.mulf %12, %13 : vector<16x32xf32>
    %16 = math.tanh %15 : vector<16x32xf32>
    %17 = arith.mulf %14, %16 : vector<16x32xf32>
    %18 = tpu.concatenate %17, %15 in 1 : vector<16x32xf32>, vector<16x32xf32> -> vector<16x64xf32>
    %c0_6 = arith.constant 0 : index
    %c0_7 = arith.constant 0 : index
    %19 = vector.load %arg3[%c0_6, %c0_7] : memref<16x64xf32, #tpu.memory_space<vmem>>, vector<16x64xf32>
    tpu.vector_store %arg3[%c0_6, %c0_7], %18 {strides = array<i32>} : memref<16x64xf32, #tpu.memory_space<vmem>>, vector<16x64xf32>,
    return
  }
}

</mosaic_0001>

<bundles_post_ra>
// kernel: _forward_nohidden.1
= control target key start
LH: loop header
LB: loop body
LE: loop exit
PB: predicated region body
PF: predicated region fallthrough
CT: control target
= control target key end

     0   :  { %vm28_vm0 = vcmask 1043456   ;;  %vm21_vm1 = vcmask 31744   ;;  %vm133_vm10 = vcmask 261120   ;;  %vm136_vm11 = vcmask 523264   ;;  %s210_s1 = inlined_call_operand.vmem [shape: f32[4,128], index: 1, kind: input, shape index: {}]   ;;  %s211_s0 = inlined_call_operand.vmem [shape: f32[16,4], index: 0, kind: input, shape index: {}]   ;;  %s212_s2 = inlined_call_operand.vmem [shape: f32[1,128], index: 2, kind: input, shape index: {}]   ;;  %s213_s3 = inlined_call_operand.vmem [shape: f32[16,64], index: 3, kind: output, shape index: {}]  }
   0x1   :  { %v16_v0 = vld [vmem:[%s210_s1] sm:$0xf]  ;;  %v15_v2 = vld [vmem:[%s211_s0 + $0x8] sm:$0xff]  ;;  %s169_s1 = smov 64  }
   0x2   :  { %v14_v1 = vld [vmem:[%s211_s0] sm:$0xff]  ;;  %143 = vmatpush.msk.msra.mxu0 %vm28_vm0, %v16_v0  ;;  %148 = vmatpush.msk.msra.mxu1 %vm28_vm0, %v16_v0  ;;  %s170_s0 = smov 32  }
   0x3   :  { %144 = vmatmul.msk.f32.vlgmr.msra.gmra.mxu0 %vm21_vm1, %v14_v1  ;;  %145 = vmatmul.msk.f32.vlgmr.msra.gmra.mxu1 %vm21_vm1, %v15_v2  ;;  %v152_v3 = vld [vmem:[%s212_s2] ss:$0 sm:$0xff]  ;;  %s171_s2 = smov 96  }
  0x80   :  { %v49_v4 = vpop.f32.mrf.mxu0  ;;  %v52_v6 = vpop.f32.mrf.mxu1 }
  0x81   :  { %v50_v5 = vadd.f32 %v152_v3, %v49_v4  ;;  %v53_v7 = vadd.f32 %v152_v3, %v52_v6 }
  0x83   :  { %153 = vtanh.f32 %v50_v5  ;;  %v146_v10 = vmul.f32 -1.442695, %v50_v5  ;;  %v147_v11 = vmul.f32 -1.442695, %v53_v7 }
  0x84   :  { %155 = vtanh.f32 %v53_v7 }
  0x85   :  { %157 = vpow2.f32 %v146_v10 }
  0x86   :  { %159 = vpow2.f32 %v147_v11 }
  0x89   :  { %v154_v8 = vpop.eup %153 }
  0x8a   :  { %97 = vrot.lane.b32.xlu0 %v154_v8, %s169_s1  ;;  %v156_v9 = vpop.eup %155 }
  0x8b   :  { %v158_v12 = vpop.eup %157 }
  0x8c   :  { %v61_v13 = vadd.f32 1.0, %v158_v12  ;;  %v160_v14 = vpop.eup %159 }
  0x8d   :  { %v62_v15 = vadd.f32 1.0, %v160_v14 }
  0x8e   :  { %161 = vrcp.f32 %v61_v13  ;;  %v74_v24 = vand.u32 2147483648, %v61_v13  ;;  %vm68_vm3 = vweird.f32 %v61_v13  ;;  %v72_v25 = vand.u32 2147483647, %v61_v13 }
  0x8f   :  { %163 = vrcp.f32 %v62_v15  ;;  %vm83_vm6 = vweird.f32 %v62_v15  ;;  %v89_v33 = vand.u32 2147483648, %v62_v15  ;;  %v87_v34 = vand.u32 2147483647, %v62_v15 }
  0x90   :  { %v75_v28 = vor.u32 1.1754944e-38, %v74_v24  ;;  %vm73_vm5 = vcmp.eq.f32.partialorder %v72_v25, 8.507059e+37 }
  0x91   :  { %v90_v36 = vor.u32 1.1754944e-38, %v89_v33  ;;  %vm88_vm9 = vcmp.eq.f32.partialorder %v87_v34, 8.507059e+37 }
  0x92   :  { %99 = vrot.lane.b32.xlu0 %v156_v9, %s169_s1 }
  0x94   :  { %v162_v16 = vpop.eup %161 }
  0x95   :  { %v64_v17 = vmul.f32 %v162_v16, %v61_v13  ;;  %v164_v19 = vpop.eup %163  ;;  %vm69_vm2 = vweird.f32 %v162_v16 }
  0x96   :  { %v79_v21 = vmul.f32 %v164_v19, %v62_v15  ;;  %vm70_vm4 = vmor %vm68_vm3, %vm69_vm2  ;;  %vm84_vm7 = vweird.f32 %v164_v19 }
  0x97   :  { %v65_v18 = vsub.f32 1.0, %v64_v17  ;;  %vm85_vm8 = vmor %vm83_vm6, %vm84_vm7 }
  0x98   :  { %v80_v23 = vsub.f32 1.0, %v79_v21 }
  0x99   :  { %v66_v20 = vmul.f32 %v162_v16, %v65_v18 }
  0x9a   :  { %v81_v27 = vmul.f32 %v164_v19, %v80_v23 }
  0x9b   :  { %v67_v22 = vadd.f32 %v162_v16, %v66_v20 }
  0x9c   :  { %v82_v32 = vadd.f32 %v164_v19, %v81_v27 }
  0x9d   :  { %v71_v26 = vsel %vm70_vm4, %v162_v16, %v67_v22 }
  0x9e   :  { %v76_v30 = vsel %vm73_vm5, %v75_v28, %v71_v26  ;;  %v86_v35 = vsel %vm85_vm8, %v164_v19, %v82_v32 }
  0x9f   :  { %v91_v37 = vsel %vm88_vm9, %v90_v36, %v86_v35 }
  0xfc   :  { %v98_v29 = vpop.permute.xlu0 %97 }
  0xfd   :  { %v103_v31 = vmul.f32 %v98_v29, %v76_v30 }
  0xff   :  { %165 = vtanh.f32 %v103_v31  ;;  %127 = vrot.lane.b32.xlu0 %v103_v31, %s170_s0 }
 0x104   :  { %v100_v38 = vpop.permute.xlu0 %99 }
 0x105   :  { %v166_v39 = vpop.eup %165  ;;  %v104_v40 = vmul.f32 %v100_v38, %v91_v37 }
 0x106   :  { %109 = vrot.lane.b32.xlu1 %v166_v39, %s171_s2 }
 0x107   :  { %167 = vtanh.f32 %v104_v40 }
 0x10d   :  { %v168_v41 = vpop.eup %167 }
 0x10e   :  { %111 = vrot.lane.b32.xlu1 %v168_v41, %s171_s2 }
 0x116   :  { %129 = vrot.lane.b32.xlu1 %v104_v40, %s170_s0 }
 0x171   :  { %v128_v46 = vpop.permute.xlu0 %127 }
 0x178   :  { %v110_v42 = vpop.permute.xlu1 %109 }
 0x179   :  { %v115_v43 = vmul.f32 %v110_v42, %v76_v30 }
 0x17b   :  { %119 = vrot.lane.b32.xlu2 %v115_v43, %s170_s0 }
 0x180   :  { %v112_v44 = vpop.permute.xlu1 %111 }
 0x181   :  { %v116_v45 = vmul.f32 %v112_v44, %v91_v37 }
 0x183   :  { %121 = vrot.lane.b32.xlu2 %v116_v45, %s170_s0 }
 0x188   :  { %v130_v49 = vpop.permute.xlu1 %129 }
 0x1d5   :  { %v120_v47 = vpop.permute.xlu2 %119 }
 0x1d6   :  { %v134_v48 = vsel %vm133_vm10, %v120_v47, %v128_v46 }
 0x1d7   :  { %137 = vst.msk [vmem:[%s213_s3] sm:$0xff] %vm136_vm11, %v134_v48 }
 0x1dd   :  { %v122_v50 = vpop.permute.xlu2 %121 }
 0x1de   :  { %v135_v51 = vsel %vm133_vm10, %v122_v50, %v130_v49 }
 0x1df   :  { %138 = vst.msk [vmem:[%s213_s3 + $0x8] sm:$0xff] %vm136_vm11, %v135_v51 }

</bundles_post_ra>
